<compile_context>
chip_gen: v5e
topology: v5e:2x2
jax: 0.10.0
libtpu: 0.0.40
codegen_flags: <defaults>
</compile_context>

<pallas_src>
import jax
import jax.numpy as jnp
from jax.experimental import pallas as pl
from jax.experimental.pallas import tpu as pltpu

LANE = 128
_VMEM_BUDGET = 32 * 1024 * 1024  # explicit budget, safe on v5e/v6e/v7x


def _pick_tile(n, candidates=(1024, 512, 256, 128)):
    """Largest MXU/lane-aligned tile that evenly divides n (else full n)."""
    for t in candidates:
        if n >= t and n % t == 0:
            return t
    return n


# -----------------------------------------------------------------------------
# Kernel 1: tiny linear layer  z = X @ W  (class dim already padded to 128)
# -----------------------------------------------------------------------------
def _linear_kernel(x_ref, w_ref, o_ref):
    o_ref[...] = jnp.dot(
        x_ref[...], w_ref[...], preferred_element_type=jnp.float32
    ).astype(o_ref.dtype)


def _linear(x, w):
    n, f = x.shape
    cpad = w.shape[1]
    tm = _pick_tile(n)
    return pl.pallas_call(
        _linear_kernel,
        out_shape=jax.ShapeDtypeStruct((n, cpad), jnp.bfloat16),
        grid_spec=pltpu.PrefetchScalarGridSpec(
            num_scalar_prefetch=0,
            grid=(n // tm,),
            in_specs=[
                pl.BlockSpec((tm, f), lambda i: (i, 0)),
                pl.BlockSpec((f, cpad), lambda i: (0, 0)),
            ],
            out_specs=pl.BlockSpec((tm, cpad), lambda i: (i, 0)),
        ),
        compiler_params=pltpu.CompilerParams(
            dimension_semantics=("parallel",),
            vmem_limit_bytes=_VMEM_BUDGET,
        ),
    )(x, w)


# -----------------------------------------------------------------------------
# Kernel 2: one propagation pass  out = S @ z  (tiled reduction over S columns)
# The second pass additionally adds the bias and applies masked log_softmax.
# -----------------------------------------------------------------------------
def _make_prop_kernel(num_classes, finalize):
    def kernel(s_ref, z_ref, b_ref, o_ref, acc_ref):
        k = pl.program_id(1)

        @pl.when(k == 0)
        def _():
            acc_ref[...] = jnp.zeros_like(acc_ref)

        acc_ref[...] += jnp.dot(
            s_ref[...], z_ref[...], preferred_element_type=jnp.float32
        )

        @pl.when(k == pl.num_programs(1) - 1)
        def _():
            acc = acc_ref[...]
            if finalize:
                logits = acc + b_ref[...]
                # Mask padded class columns to -inf so they don't affect the
                # softmax normalization.
                col = jax.lax.broadcasted_iota(jnp.int32, logits.shape, 1)
                logits = jnp.where(
                    col < num_classes, logits, jnp.full_like(logits, -1e30)
                )
                m = jnp.max(logits, axis=1, keepdims=True)
                zc = logits - m
                lse = jnp.log(jnp.sum(jnp.exp(zc), axis=1, keepdims=True))
                o_ref[...] = (zc - lse).astype(o_ref.dtype)
            else:
                o_ref[...] = acc.astype(o_ref.dtype)

    return kernel


def _propagate(s, z, b, num_classes, *, finalize, out_dtype):
    n = s.shape[0]
    cpad = z.shape[1]
    tm = _pick_tile(n)
    tk = _pick_tile(n)
    kernel = _make_prop_kernel(num_classes, finalize)
    return pl.pallas_call(
        kernel,
        out_shape=jax.ShapeDtypeStruct((n, cpad), out_dtype),
        grid_spec=pltpu.PrefetchScalarGridSpec(
            num_scalar_prefetch=0,
            grid=(n // tm, n // tk),
            in_specs=[
                pl.BlockSpec((tm, tk), lambda i, k: (i, k)),      # S tile
                pl.BlockSpec((tk, cpad), lambda i, k: (k, 0)),    # z slab
                pl.BlockSpec((1, cpad), lambda i, k: (0, 0)),     # bias
            ],
            out_specs=pl.BlockSpec((tm, cpad), lambda i, k: (i, 0)),
            scratch_shapes=[pltpu.VMEM((tm, cpad), jnp.float32)],
        ),
        compiler_params=pltpu.CompilerParams(
            dimension_semantics=("parallel", "arbitrary"),
            vmem_limit_bytes=_VMEM_BUDGET,
        ),
    )(s, z, b)


# -----------------------------------------------------------------------------
# Full SGC forward
# -----------------------------------------------------------------------------
def sgc_forward(s, x, w, b):
    """log_softmax(S @ S @ (X @ W) + b, axis=1).

    s: [N, N] gcn-normalized dense adjacency
    x: [N, F] node features
    w: [F, C] linear weight ([C, F] torch layout, pre-transposed)
    b: [1, C] bias
    returns [N, C] float32 log-probabilities.
    """
    n, f = x.shape
    c = w.shape[1]
    cpad = ((c + LANE - 1) // LANE) * LANE

    # Lane-dense padded params; bf16 for the streamed operands.
    w_pad = jnp.zeros((f, cpad), jnp.bfloat16).at[:, :c].set(w.astype(jnp.bfloat16))
    b_pad = jnp.zeros((1, cpad), jnp.float32).at[:, :c].set(b.astype(jnp.float32))
    s_bf = s.astype(jnp.bfloat16)
    x_bf = x.astype(jnp.bfloat16)

    z = _linear(x_bf, w_pad)                                        # [N, Cpad] bf16
    h1 = _propagate(s_bf, z, b_pad, c, finalize=False,
                    out_dtype=jnp.bfloat16)                         # [N, Cpad] bf16
    out = _propagate(s_bf, h1, b_pad, c, finalize=True,
                     out_dtype=jnp.float32)                         # [N, Cpad] f32
    return out[:, :c]


# -----------------------------------------------------------------------------
# Glue (plain JAX): dense gcn-normalized adjacency from edge_index, matching
# torch_geometric gcn_norm with add_remaining_self_loops (existing self-loops
# are NOT double-counted).
# -----------------------------------------------------------------------------
def gcn_norm_dense(edge_index, num_nodes):
    src, dst = edge_index[0], edge_index[1]
    a = jnp.zeros((num_nodes, num_nodes), dtype=jnp.float32)
    a = a.at[dst, src].add(1.0)
    idx = jnp.arange(num_nodes)
    diag = a[idx, idx]
    # add_remaining_self_loops: add weight-1 self loop only where none exists
    a = a.at[idx, idx].set(jnp.where(diag > 0, diag, 1.0))
    deg = jnp.sum(a, axis=1)
    dinv = jnp.where(deg > 0, 1.0 / jnp.sqrt(deg), 0.0)
    return dinv[:, None] * a * dinv[None, :]


if __name__ == "__main__":
    num_nodes = 384      # tile = 128 -> 3x3 propagation grid (exercises tiling)
    num_features = 16    # args.p stand-in
    num_classes = 2
    num_edges = 1024

    key = jax.random.PRNGKey(0)
    kx, ke, kw, kb = jax.random.split(key, 4)

    # Node features
    x = jax.random.normal(kx, (num_nodes, num_features), dtype=jnp.float32)

    # Deterministic random directed graph
    edge_index = jax.random.randint(ke, (2, num_edges), 0, num_nodes, dtype=jnp.int32)

    # SGConv's single Linear(num_features, num_classes); stored as [F, C].
    limit = jnp.sqrt(6.0 / (num_features + num_classes))
    w = jax.random.uniform(kw, (num_features, num_classes), jnp.float32, -limit, limit)
    b = jax.random.uniform(kb, (1, num_classes), jnp.float32, -0.1, 0.1)

    # Normalized adjacency (glue, plain JAX; scatter-add not done in Pallas)
    s = gcn_norm_dense(edge_index, num_nodes)

    out = sgc_forward(s, x, w, b)
    out = jax.block_until_ready(out)
    assert out.shape == (num_nodes, num_classes)

    # Pure-JAX reference mimicking the kernel's bf16 storage / f32 accumulation.
    s_r = s.astype(jnp.bfloat16).astype(jnp.float32)
    x_r = x.astype(jnp.bfloat16).astype(jnp.float32)
    w_r = w.astype(jnp.bfloat16).astype(jnp.float32)
    z_r = (x_r @ w_r).astype(jnp.bfloat16).astype(jnp.float32)
    h_r = (s_r @ z_r).astype(jnp.bfloat16).astype(jnp.float32)
    ref = jax.nn.log_softmax(s_r @ h_r + b, axis=1)
    assert jnp.allclose(out, ref, atol=5e-3, rtol=5e-3), float(
        jnp.max(jnp.abs(out - ref))
    )

    print("KERNEL_OK")
</pallas_src>

<mosaic_0001>
module attributes {stable_mosaic.version = 11 : i64} {
  func.func @_linear_kernel(%arg0: i32, %arg1: memref<128x16xbf16, #tpu.memory_space<vmem>>, %arg2: memref<16x128xbf16, #tpu.memory_space<vmem>>, %arg3: memref<128x128xbf16, #tpu.memory_space<vmem>>) attributes {dimension_semantics = [#tpu.dimension_semantics<parallel>], iteration_bounds = array<i64: 3>, scalar_prefetch = 0 : i64, scratch_operands = 0 : i64, tpu.core_type = #tpu.core_type<tc>, window_params = [{transform_indices = @transform_0, window_bounds = array<i64: 128, 16>}, {pipeline_mode = #tpu.pipeline_mode<synchronous>, transform_indices = @transform_1, window_bounds = array<i64: 16, 128>}, {transform_indices = @transform_2, window_bounds = array<i64: 128, 128>}]} {
    %c0 = arith.constant 0 : index
    %c0_0 = arith.constant 0 : index
    %0 = vector.load %arg1[%c0, %c0_0] : memref<128x16xbf16, #tpu.memory_space<vmem>>, vector<128x16xbf16>
    %c0_1 = arith.constant 0 : index
    %c0_2 = arith.constant 0 : index
    %1 = vector.load %arg2[%c0_1, %c0_2] : memref<16x128xbf16, #tpu.memory_space<vmem>>, vector<16x128xbf16>
    %cst = arith.constant dense<0.000000e+00> : vector<128x128xf32>
    %2 = tpu.matmul %0, %1, %cst {dimension_numbers = #tpu.dot_dimension_numbers<[1], [0], [0], [1], [0, 0, 1, 1], [], []>} : vector<128x16xbf16>, vector<16x128xbf16>, vector<128x128xf32> -> vector<128x128xf32>
    %3 = arith.truncf %2 : vector<128x128xf32> to vector<128x128xbf16>
    %c0_3 = arith.constant 0 : index
    %c0_4 = arith.constant 0 : index
    %4 = vector.load %arg3[%c0_3, %c0_4] : memref<128x128xbf16, #tpu.memory_space<vmem>>, vector<128x128xbf16>
    tpu.vector_store %arg3[%c0_3, %c0_4], %3 {strides = array<i32>} : memref<128x128xbf16, #tpu.memory_space<vmem>>, vector<128x128xbf16>,
    return
  }
  func.func @transform_0(%arg0: i32) -> (i32, i32) {
    %c0_i32 = arith.constant 0 : i32
    %c0_i32_0 = arith.constant 0 : i32
    return %arg0, %c0_i32 : i32, i32
  }
  func.func @transform_1(%arg0: i32) -> (i32, i32) {
    %c0_i32 = arith.constant 0 : i32
    %c0_i32_0 = arith.constant 0 : i32
    %c0_i32_1 = arith.constant 0 : i32
    return %c0_i32, %c0_i32_0 : i32, i32
  }
  func.func @transform_2(%arg0: i32) -> (i32, i32) {
    %c0_i32 = arith.constant 0 : i32
    %c0_i32_0 = arith.constant 0 : i32
    return %arg0, %c0_i32 : i32, i32
  }
}

</mosaic_0001>

<bundles_post_ra>
// kernel: tpu_custom_call.1
= control target key start
LH: loop header
LB: loop body
LE: loop exit
PB: predicated region body
PF: predicated region fallthrough
CT: control target
= control target key end

     0   :  { %7 = vsyncpa [#allocation3], 0  ;;  %s731_s0 = inlined_call_operand.vmem [shape: bf16[384,16], index: 0, kind: input, shape index: {}]   ;;  %s732_s1 = inlined_call_operand.vmem [shape: bf16[16,128], index: 1, kind: input, shape index: {}]   ;;  %s733_s2 = inlined_call_operand.hbm [shape: bf16[384,128], index: 2, kind: output, shape index: {}]  }
   0x1   :  { %9 = vsyncpa [#allocation3 + $0x1], 0  ;;  %s632_s9 = smov 0   ;;  %s634_s10 = smov 0  }
   0x2   :  { %s636_s11 = smov 0   ;;  %s638_s12 = smov 0  }
   0x3 LB: > { %s653_s13 = sadd.s32 4294967295, %s613_s12   ;;  %s394_s14 = sadd.s32 4294967294, %s613_s12   ;;  %s613_s12 = sphi %s638_s12, %s739_s12   ;;  %s609_s11 = sphi %s636_s11, %s738_s11   ;;  %s605_s10 = sphi %s634_s10, %s737_s10   ;;  %s601_s9 = sphi %s632_s9, %s736_s9  }
   0x4   : > { %s657_s15 = sadd.s32 1, %s613_s12   ;;  %s69_s16 = sadd.s32 1, %s609_s11 }
   0x5   : > { %s66_s17 = ssub.s32 %s613_s12, %s657_s15  ;;  %p79_p0 = scmp.ne.s32.totalorder %s609_s11, %s605_s10 }
   0x6   : > { %p67_p1 = scmp.eq.s32.totalorder %s66_s17, 0  ;;  %p80_p2 = scmp.eq.s32.totalorder %s653_s13, 2 }
   0x7   : > { %p85_p3 = scmp.ne.s32.totalorder %s605_s10, %s601_s9  ;;  %p86_p4 = scmp.eq.s32.totalorder %s394_s14, 2 }
   0x8   : > { %s668_s18 = scalar_select %p67_p1, %s609_s11, %s69_s16  }
   0x9   : > { %p670_p5 = por %p80_p2, %p79_p0  ;;  %p674_p6 = por %p86_p4, %p85_p3 }
   0xa   : > { %p397_p7 = scmp.ge.s32.totalorder %s613_s12, 1  ;;  %p116_p8 = scmp.lt.s32.totalorder %s613_s12, 4 }
   0xc   : > { %p117_p9 = pnand %p397_p7, %p116_p8 }
   0xd   : > { %s399_s23 = sshll.u32 (!%p117_p9), %s653_s13, 4  ;;  %s135_s28 = sand.u32 (!%p117_p9), 1, %s605_s10  }
   0xe   : > { %120 = sbr.rel (%p117_p9) target bundleno = 187 (0xbb), region = 28  ;;  %p139_p10 = scmp.lt.s32.totalorder (!%p117_p9), %s399_s23, 47 }
   0xf   : > { %s398_s29 = sshll.u32 (!%p117_p9), %s135_s28, 6  ;;  %s459_s3 = sshll.u32 (!%p117_p9), %s653_s13, 6 }
  0x10   : > { %s137_s30 = scalar_lea.vmem (!%p117_p9), [#allocation2], %s398_s29  ;;  %s328_s6 = scalar_lea.hbm (!%p117_p9), %s733_s2, %s459_s3 }
  0x11   : > { %s329_s7 = sshll.u32 (!%p117_p9), %s137_s30, 4  ;;  %s331_s8 = sshll.u32 (!%p117_p9), %s328_s6, 4  ;;  %s330_s7 = int_to_ptr.vmem [resolvable:$true] %s329_s7  ;;  %s332_s8 = int_to_ptr.hbm [resolvable:$true] %s331_s8 }
  0x12   : > { %s317_s13 = scalar_lea.sflag (!%p117_p9), [#allocation3], %s135_s28  ;;  %s565_s14 = sshra.s32 (!%p117_p9), %s332_s8, 4  ;;  %s566_s14 = int_to_ptr.hbm [resolvable:$true] %s565_s14 }
  0x13   : > { %v458_v0 = vld [vmem:[%s732_s1] sm:$0xff]  ;;  %s741_s23 = smov (!%p139_p10, %s399_s23), 47  ;;  %vm210_vm0 = vcmask 130048   ;;  %s567_s16 = scalar_lea.hbm %s566_s14, 64 }
  0x14   : > { %242 = vmatpush.bf16.msra.mxu0 %v458_v0  ;;  %507 = vmatpush.bf16.msra.mxu1 %v458_v0  ;;  %s400_s24 = sshll.u32 %s741_s23, 2  ;;  %p568_p11 = scmp.ne.s32.totalorder %s566_s14, %s567_s16 }
  0x15   : > { %508 = vmatpush.bf16.msra.mxu2 %v458_v0  ;;  %509 = vmatpush.bf16.msra.mxu3 %v458_v0  ;;  %s142_s27 = scalar_lea.vmem %s731_s0, %s400_s24  ;;  %s571_s22 = scalar_lea.hbm %s733_s2, 192 }
  0x16   : > { %v450_v1 = vld [vmem:[%s142_s27] sm:$0xff]  ;;  %v452_v2 = vld [vmem:[%s142_s27 + $0x10] sm:$0xff]  ;;  %v451_v5 = vld [vmem:[%s142_s27 + $0x8] sm:$0xff]  ;;  %p569_p12 = pnand %p568_p11, %p670_p5  ;;  %p572_p0 = scmp.lt.s32.totalorder %s566_s14, %s733_s2 }
  0x17   : > { %v454_v3 = vld [vmem:[%s142_s27 + $0x20] sm:$0xff]  ;;  %v456_v4 = vld [vmem:[%s142_s27 + $0x30] sm:$0xff]  ;;  %437 = vmatmul.msk.bf16.vlgmr.msra.gmra.mxu0 %vm210_vm0, %v450_v1  ;;  %439 = vmatmul.msk.bf16.vlgmr.msra.gmra.mxu1 %vm210_vm0, %v452_v2  ;;  %v453_v6 = vld [vmem:[%s142_s27 + $0x18] sm:$0xff]  ;;  %p573_p1 = scmp.lt.s32.totalorder %s571_s22, %s567_s16 }
  0x18   : > { %441 = vmatmul.msk.bf16.vlgmr.msra.gmra.mxu2 %vm210_vm0, %v454_v3  ;;  %443 = vmatmul.msk.bf16.vlgmr.msra.gmra.mxu3 %vm210_vm0, %v456_v4  ;;  %v455_v7 = vld [vmem:[%s142_s27 + $0x28] sm:$0xff]  ;;  %v457_v8 = vld [vmem:[%s142_s27 + $0x38] sm:$0xff]  ;;  %p570_p13 = pneg %p569_p12 }
  0x19   : > { %p574_p2 = por %p573_p1, %p572_p0 }
  0x1b   : > { %p575_p3 = pnand %p574_p2, %p570_p13 }
  0x27   : > { %438 = vmatmul.msk.bf16.gmra.mxu0 %vm210_vm0, %v451_v5  ;;  %440 = vmatmul.msk.bf16.gmra.mxu1 %vm210_vm0, %v453_v6 }
  0x28   : > { %442 = vmatmul.msk.bf16.gmra.mxu2 %vm210_vm0, %v455_v7  ;;  %444 = vmatmul.msk.bf16.gmra.mxu3 %vm210_vm0, %v457_v8 }
  0x94   : > { %v244_v9 = vpop.f32.mrf.mxu0  ;;  %v254_v10 = vpop.f32.mrf.mxu1 }
  0x9b   : > { %v264_v11 = vpop.f32.mrf.mxu2  ;;  %v274_v12 = vpop.f32.mrf.mxu3 }
  0x9c   : > { %v246_v13 = vpop.f32.mrf.mxu0  ;;  %v256_v14 = vpop.f32.mrf.mxu1 }
  0x9d   : > { %v463_v15 = vpack.c.bf16 %v246_v13, %v244_v9  ;;  %v473_v16 = vpack.c.bf16 %v256_v14, %v254_v10 }
  0x9f   : > { %464 = vst [vmem:[%s137_s30] sm:$0xff] %v463_v15  }
  0xa0   : > { %501 = vst [vmem:[%s137_s30 + $0x10] sm:$0xff] %v473_v16  }
  0xa3   : > { %v266_v17 = vpop.f32.mrf.mxu2  ;;  %v276_v18 = vpop.f32.mrf.mxu3 }
  0xa4   : > { %v483_v19 = vpack.c.bf16 %v266_v17, %v264_v11  ;;  %v493_v20 = vpack.c.bf16 %v276_v18, %v274_v12  ;;  %v249_v21 = vpop.f32.mrf.mxu0  ;;  %v259_v22 = vpop.f32.mrf.mxu1 }
  0xa6   : > { %503 = vst [vmem:[%s137_s30 + $0x20] sm:$0xff] %v483_v19  }
  0xa7   : > { %505 = vst [vmem:[%s137_s30 + $0x30] sm:$0xff] %v493_v20  }
  0xab   : > { %v269_v23 = vpop.f32.mrf.mxu2  ;;  %v279_v24 = vpop.f32.mrf.mxu3 }
  0xac   : > { %v251_v25 = vpop.f32.mrf.mxu0  ;;  %v261_v26 = vpop.f32.mrf.mxu1 }
  0xad   : > { %v468_v27 = vpack.c.bf16 %v251_v25, %v249_v21  ;;  %v478_v28 = vpack.c.bf16 %v261_v26, %v259_v22 }
  0xaf   : > { %500 = vst [vmem:[%s137_s30 + $0x8] sm:$0xff] %v468_v27  }
  0xb0   : > { %502 = vst [vmem:[%s137_s30 + $0x18] sm:$0xff] %v478_v28  }
  0xb3   : > { %v271_v29 = vpop.f32.mrf.mxu2  ;;  %v281_v30 = vpop.f32.mrf.mxu3 }
  0xb4   : > { %v488_v31 = vpack.c.bf16 %v271_v29, %v269_v23  ;;  %v498_v32 = vpack.c.bf16 %v281_v30, %v279_v24 }
  0xb6   : > { %504 = vst [vmem:[%s137_s30 + $0x28] sm:$0xff] %v488_v31  }
  0xb7   : > { %506 = vst [vmem:[%s137_s30 + $0x38] sm:$0xff] %v498_v32  }
  0xb8   : > { %578 = shalt.err (!%p575_p3)
}
  0xb9   : > { %s615_s25 = smov 64   ;;  %s616_s26 = smov 4  }
  0xba   : > { %510 = dma.vmem_to_hbm [thread:$0]  (%p670_p5), %s330_s7, 1024, %s332_s8, %s317_s13, %s615_s25, %s615_s25, %s616_s26  }
  0xbb PF: > { %p516_p4 = scmp.ge.s32.totalorder %s613_s12, 2  ;;  %s346_s27 = sand.u32 1, %s601_s9  }
  0xbc   : > { %s347_s28 = scalar_lea.sflag [#allocation3], %s346_s27 }
  0xbd   : > { %p513_p7 = pnand %p516_p4, %p674_p6 }
  0xbf   : > { %p514_p8 = pneg %p513_p7 }
  0xc1   : > { %596 = dma.done.wait (%p514_p8), %s347_s28, 1024  }
  0xc2   : > { %598 = vsyncadd (%p514_p8), %s347_s28, 4294966272  ;;  %p12_p9 = scmp.ge.s32.totalorder %s657_s15, 5   ;;  %s736_s9 = smov %s605_s10 }
  0xc3   : > { %s737_s10 = smov %s609_s11  ;;  %s738_s11 = smov %s668_s18 }
  0xc4   : > { %s739_s12 = smov %s657_s15  ;;  %14 = sbr.rel (!%p12_p9) target bundleno = 3 (0x3), region = 63 }
  0xc9   :  { %353 = vsyncpa [#allocation3], 1 }
  0xca   :  { %355 = vsyncpa [#allocation3 + $0x1], 1 }

</bundles_post_ra>
